<compile_context>
chip_gen: v5e
topology: v5e:2x2
jax: 0.10.0
libtpu: 0.0.40
codegen_flags: <defaults>
</compile_context>

<pallas_src>
import math

import jax
import jax.numpy as jnp
from jax import lax
from jax.experimental import pallas as pl
from jax.experimental.pallas import tpu as pltpu

IN_DIM = 28 * 28          # 784
PAD_DIM = 128             # lane-dense width for all hidden layers + logits
NUM_CLASSES = 10
NEG_LARGE = -1e30         # plain Python float -> lowered as an immediate, not captured


def mlp_kernel(x_ref, w1_ref, b1_ref, w2_ref, b2_ref, w3_ref, b3_ref,
               w4_ref, b4_ref, o_ref):
    # x_ref: (TB, 784) bf16; weights bf16 (padded to 128-wide); biases f32.
    # fc1 + relu  (bf16 x bf16 -> f32 accumulate on MXU)
    h = jnp.dot(x_ref[...], w1_ref[...], preferred_element_type=jnp.float32)
    h = jnp.maximum(h + b1_ref[...], 0.0)
    # fc2 + relu (padded 64 -> 128 columns; pad cols stay exactly 0)
    h = jnp.dot(h.astype(jnp.bfloat16), w2_ref[...],
                preferred_element_type=jnp.float32)
    h = jnp.maximum(h + b2_ref[...], 0.0)
    # fc3 + relu (padded 32 -> 128 columns)
    h = jnp.dot(h.astype(jnp.bfloat16), w3_ref[...],
                preferred_element_type=jnp.float32)
    h = jnp.maximum(h + b3_ref[...], 0.0)
    # fc4 (no activation; padded 10 -> 128 columns)
    logits = jnp.dot(h.astype(jnp.bfloat16), w4_ref[...],
                     preferred_element_type=jnp.float32)
    logits = logits + b4_ref[...]
    # mask padded logit columns so log_softmax only sees the 10 real classes
    col = lax.broadcasted_iota(jnp.int32, logits.shape, 1)
    logits = jnp.where(col < NUM_CLASSES, logits, NEG_LARGE)
    # log_softmax over the class axis (all f32)
    m = jnp.max(logits, axis=-1, keepdims=True)
    s = logits - m
    lse = jnp.log(jnp.sum(jnp.exp(s), axis=-1, keepdims=True))
    o_ref[...] = s - lse


def _pad_to(a, shape):
    pads = [(0, t - s) for s, t in zip(a.shape, shape)]
    return jnp.pad(a, pads)


def net_forward(x, params):
    """x: (B, 1, 28, 28) or (B, 784). Returns (B, 10) float32 log-probs."""
    x2d = x.reshape(-1, IN_DIM)
    B = x2d.shape[0]
    (w1, b1), (w2, b2), (w3, b3), (w4, b4) = params

    # --- weight / bias preprocessing: pad to lane-dense 128, cast matmul
    #     operands to bf16, keep biases f32 ---------------------------------
    w1p = w1.astype(jnp.bfloat16)                               # (784, 128)
    w2p = _pad_to(w2, (PAD_DIM, PAD_DIM)).astype(jnp.bfloat16)  # (128, 128)
    w3p = _pad_to(w3, (PAD_DIM, PAD_DIM)).astype(jnp.bfloat16)  # (128, 128)
    w4p = _pad_to(w4, (PAD_DIM, PAD_DIM)).astype(jnp.bfloat16)  # (128, 128)
    b1p = b1.astype(jnp.float32)                                # (1, 128)
    b2p = _pad_to(b2, (1, PAD_DIM)).astype(jnp.float32)
    b3p = _pad_to(b3, (1, PAD_DIM)).astype(jnp.float32)
    b4p = _pad_to(b4, (1, PAD_DIM)).astype(jnp.float32)

    # --- batch tiling: TB=512 for big batches (good HBM-roofline tile that
    #     still fits v7x's 64 MiB VMEM with bf16), small multiple of 8 for
    #     tiny batches. Pad B up to a multiple of TB; slice tail afterwards. --
    if B >= 512:
        TB = 512
    else:
        TB = max(8, ((B + 7) // 8) * 8)
    n_tiles = pl.cdiv(B, TB)
    B_pad = n_tiles * TB

    xb = x2d.astype(jnp.bfloat16)
    if B_pad != B:
        xb = jnp.pad(xb, ((0, B_pad - B), (0, 0)))

    # --- specs ----------------------------------------------------------------
    x_spec = pl.BlockSpec((TB, IN_DIM), lambda i: (i, 0))
    w1_spec = pl.BlockSpec((IN_DIM, PAD_DIM), lambda i: (0, 0))
    w_spec = pl.BlockSpec((PAD_DIM, PAD_DIM), lambda i: (0, 0))
    b_spec = pl.BlockSpec((1, PAD_DIM), lambda i: (0, 0))
    out_spec = pl.BlockSpec((TB, PAD_DIM), lambda i: (i, 0))

    flops = 2 * B_pad * (IN_DIM * PAD_DIM + 3 * PAD_DIM * PAD_DIM)
    bytes_accessed = (
        B_pad * IN_DIM * 2                                  # bf16 input
        + (IN_DIM * PAD_DIM + 3 * PAD_DIM * PAD_DIM) * 2    # bf16 weights
        + 4 * PAD_DIM * 4                                   # f32 biases
        + B_pad * PAD_DIM * 4                               # f32 output
    )
    cost = pl.CostEstimate(flops=flops,
                           transcendentals=B_pad * PAD_DIM,
                           bytes_accessed=bytes_accessed)

    out_pad = pl.pallas_call(
        mlp_kernel,
        out_shape=jax.ShapeDtypeStruct((B_pad, PAD_DIM), jnp.float32),
        grid_spec=pltpu.PrefetchScalarGridSpec(
            num_scalar_prefetch=0,
            grid=(n_tiles,),
            in_specs=[x_spec,
                      w1_spec, b_spec,
                      w_spec, b_spec,
                      w_spec, b_spec,
                      w_spec, b_spec],
            out_specs=out_spec,
        ),
        compiler_params=pltpu.CompilerParams(
            dimension_semantics=("parallel",)),
        cost_estimate=cost,
    )(xb, w1p, b1p, w2p, b2p, w3p, b3p, w4p, b4p)

    return out_pad[:B, :NUM_CLASSES]


def init_params(key):
    """Deterministic init mimicking torch.nn.Linear defaults (U[-1/sqrt(fan_in), +])."""
    dims = [(IN_DIM, 128), (128, 64), (64, 32), (32, 10)]
    params = []
    for fan_in, fan_out in dims:
        key, kw, kb = jax.random.split(key, 3)
        bound = 1.0 / math.sqrt(fan_in)
        # Stored transposed to (in, out) so the kernel does x @ W.
        w = jax.random.uniform(kw, (fan_in, fan_out), jnp.float32, -bound, bound)
        b = jax.random.uniform(kb, (1, fan_out), jnp.float32, -bound, bound)
        params.append((w, b))
    return params


if __name__ == "__main__":
    key = jax.random.PRNGKey(0)
    kx, kp = jax.random.split(key)
    # Small MNIST-like batch: (2, 1, 28, 28), NCHW
    x = jax.random.normal(kx, (2, 1, 28, 28), jnp.float32)
    params = init_params(kp)

    out = net_forward(x, params)
    out = jax.block_until_ready(out)

    assert out.shape == (2, 10), out.shape
    # log_softmax rows should sum (in prob space) to ~1
    assert bool(jnp.allclose(jnp.sum(jnp.exp(out), axis=1), 1.0, atol=1e-5))
    print("KERNEL_OK")
</pallas_src>

<mosaic_0001>
module attributes {stable_mosaic.version = 11 : i64} {
  func.func @mlp_kernel(%arg0: i32, %arg1: memref<8x784xbf16, #tpu.memory_space<vmem>>, %arg2: memref<784x128xbf16, #tpu.memory_space<vmem>>, %arg3: memref<1x128xf32, #tpu.memory_space<vmem>>, %arg4: memref<128x128xbf16, #tpu.memory_space<vmem>>, %arg5: memref<1x128xf32, #tpu.memory_space<vmem>>, %arg6: memref<128x128xbf16, #tpu.memory_space<vmem>>, %arg7: memref<1x128xf32, #tpu.memory_space<vmem>>, %arg8: memref<128x128xbf16, #tpu.memory_space<vmem>>, %arg9: memref<1x128xf32, #tpu.memory_space<vmem>>, %arg10: memref<8x128xf32, #tpu.memory_space<vmem>>) attributes {dimension_semantics = [#tpu.dimension_semantics<parallel>], iteration_bounds = array<i64: 1>, scalar_prefetch = 0 : i64, scratch_operands = 0 : i64, tpu.core_type = #tpu.core_type<tc>, window_params = [{transform_indices = @transform_0, window_bounds = array<i64: 8, 784>}, {pipeline_mode = #tpu.pipeline_mode<synchronous>, transform_indices = @transform_1, window_bounds = array<i64: 784, 128>}, {pipeline_mode = #tpu.pipeline_mode<synchronous>, transform_indices = @transform_2, window_bounds = array<i64: 1, 128>}, {pipeline_mode = #tpu.pipeline_mode<synchronous>, transform_indices = @transform_3, window_bounds = array<i64: 128, 128>}, {pipeline_mode = #tpu.pipeline_mode<synchronous>, transform_indices = @transform_4, window_bounds = array<i64: 1, 128>}, {pipeline_mode = #tpu.pipeline_mode<synchronous>, transform_indices = @transform_5, window_bounds = array<i64: 128, 128>}, {pipeline_mode = #tpu.pipeline_mode<synchronous>, transform_indices = @transform_6, window_bounds = array<i64: 1, 128>}, {pipeline_mode = #tpu.pipeline_mode<synchronous>, transform_indices = @transform_7, window_bounds = array<i64: 128, 128>}, {pipeline_mode = #tpu.pipeline_mode<synchronous>, transform_indices = @transform_8, window_bounds = array<i64: 1, 128>}, {transform_indices = @transform_9, window_bounds = array<i64: 8, 128>}]} {
    %c0 = arith.constant 0 : index
    %c0_0 = arith.constant 0 : index
    %0 = vector.load %arg1[%c0, %c0_0] : memref<8x784xbf16, #tpu.memory_space<vmem>>, vector<8x784xbf16>
    %c0_1 = arith.constant 0 : index
    %c0_2 = arith.constant 0 : index
    %1 = vector.load %arg2[%c0_1, %c0_2] : memref<784x128xbf16, #tpu.memory_space<vmem>>, vector<784x128xbf16>
    %cst = arith.constant dense<0.000000e+00> : vector<8x128xf32>
    %2 = tpu.matmul %0, %1, %cst {dimension_numbers = #tpu.dot_dimension_numbers<[1], [0], [0], [1], [0, 0, 1, 1], [], []>} : vector<8x784xbf16>, vector<784x128xbf16>, vector<8x128xf32> -> vector<8x128xf32>
    %c0_3 = arith.constant 0 : index
    %c0_4 = arith.constant 0 : index
    %3 = vector.load %arg3[%c0_3, %c0_4] : memref<1x128xf32, #tpu.memory_space<vmem>>, vector<1x128xf32>
    %4 = vector.broadcast %3 : vector<1x128xf32> to vector<8x128xf32>
    %5 = arith.addf %2, %4 : vector<8x128xf32>
    %cst_5 = arith.constant 0.000000e+00 : f32
    %6 = vector.broadcast %cst_5 : f32 to vector<8x128xf32>
    %7 = arith.maximumf %5, %6 : vector<8x128xf32>
    %8 = arith.truncf %7 : vector<8x128xf32> to vector<8x128xbf16>
    %c0_6 = arith.constant 0 : index
    %c0_7 = arith.constant 0 : index
    %9 = vector.load %arg4[%c0_6, %c0_7] : memref<128x128xbf16, #tpu.memory_space<vmem>>, vector<128x128xbf16>
    %cst_8 = arith.constant dense<0.000000e+00> : vector<8x128xf32>
    %10 = tpu.matmul %8, %9, %cst_8 {dimension_numbers = #tpu.dot_dimension_numbers<[1], [0], [0], [1], [0, 0, 1, 1], [], []>} : vector<8x128xbf16>, vector<128x128xbf16>, vector<8x128xf32> -> vector<8x128xf32>
    %c0_9 = arith.constant 0 : index
    %c0_10 = arith.constant 0 : index
    %11 = vector.load %arg5[%c0_9, %c0_10] : memref<1x128xf32, #tpu.memory_space<vmem>>, vector<1x128xf32>
    %12 = vector.broadcast %11 : vector<1x128xf32> to vector<8x128xf32>
    %13 = arith.addf %10, %12 : vector<8x128xf32>
    %cst_11 = arith.constant 0.000000e+00 : f32
    %14 = vector.broadcast %cst_11 : f32 to vector<8x128xf32>
    %15 = arith.maximumf %13, %14 : vector<8x128xf32>
    %16 = arith.truncf %15 : vector<8x128xf32> to vector<8x128xbf16>
    %c0_12 = arith.constant 0 : index
    %c0_13 = arith.constant 0 : index
    %17 = vector.load %arg6[%c0_12, %c0_13] : memref<128x128xbf16, #tpu.memory_space<vmem>>, vector<128x128xbf16>
    %cst_14 = arith.constant dense<0.000000e+00> : vector<8x128xf32>
    %18 = tpu.matmul %16, %17, %cst_14 {dimension_numbers = #tpu.dot_dimension_numbers<[1], [0], [0], [1], [0, 0, 1, 1], [], []>} : vector<8x128xbf16>, vector<128x128xbf16>, vector<8x128xf32> -> vector<8x128xf32>
    %c0_15 = arith.constant 0 : index
    %c0_16 = arith.constant 0 : index
    %19 = vector.load %arg7[%c0_15, %c0_16] : memref<1x128xf32, #tpu.memory_space<vmem>>, vector<1x128xf32>
    %20 = vector.broadcast %19 : vector<1x128xf32> to vector<8x128xf32>
    %21 = arith.addf %18, %20 : vector<8x128xf32>
    %cst_17 = arith.constant 0.000000e+00 : f32
    %22 = vector.broadcast %cst_17 : f32 to vector<8x128xf32>
    %23 = arith.maximumf %21, %22 : vector<8x128xf32>
    %24 = arith.truncf %23 : vector<8x128xf32> to vector<8x128xbf16>
    %c0_18 = arith.constant 0 : index
    %c0_19 = arith.constant 0 : index
    %25 = vector.load %arg8[%c0_18, %c0_19] : memref<128x128xbf16, #tpu.memory_space<vmem>>, vector<128x128xbf16>
    %cst_20 = arith.constant dense<0.000000e+00> : vector<8x128xf32>
    %26 = tpu.matmul %24, %25, %cst_20 {dimension_numbers = #tpu.dot_dimension_numbers<[1], [0], [0], [1], [0, 0, 1, 1], [], []>} : vector<8x128xbf16>, vector<128x128xbf16>, vector<8x128xf32> -> vector<8x128xf32>
    %c0_21 = arith.constant 0 : index
    %c0_22 = arith.constant 0 : index
    %27 = vector.load %arg9[%c0_21, %c0_22] : memref<1x128xf32, #tpu.memory_space<vmem>>, vector<1x128xf32>
    %28 = vector.broadcast %27 : vector<1x128xf32> to vector<8x128xf32>
    %29 = arith.addf %26, %28 : vector<8x128xf32>
    %30 = tpu.iota {dimensions = array<i32: 1>} : vector<8x128xi32>
    %c10_i32 = arith.constant 10 : i32
    %31 = vector.broadcast %c10_i32 : i32 to vector<8x128xi32>
    %32 = arith.cmpi slt, %30, %31 : vector<8x128xi32>
    %cst_23 = arith.constant -1.000000e+30 : f32
    %33 = vector.broadcast %cst_23 : f32 to vector<8x128xf32>
    %34 = arith.select %32, %29, %33 : vector<8x128xi1>, vector<8x128xf32>
    %cst_24 = arith.constant dense<0xFF800000> : vector<8xf32>
    %35 = vector.multi_reduction <maximumf>, %34, %cst_24 [1] : vector<8x128xf32> to vector<8xf32>
    %36 = vector.shape_cast %35 : vector<8xf32> to vector<8x1xf32>
    %37 = vector.broadcast %36 : vector<8x1xf32> to vector<8x128xf32>
    %38 = arith.subf %34, %37 : vector<8x128xf32>
    %39 = math.exp %38 : vector<8x128xf32>
    %cst_25 = arith.constant dense<0.000000e+00> : vector<8xf32>
    %40 = vector.multi_reduction <add>, %39, %cst_25 [1] : vector<8x128xf32> to vector<8xf32>
    %41 = vector.shape_cast %40 : vector<8xf32> to vector<8x1xf32>
    %42 = math.log %41 : vector<8x1xf32>
    %43 = vector.broadcast %42 : vector<8x1xf32> to vector<8x128xf32>
    %44 = arith.subf %38, %43 : vector<8x128xf32>
    %c0_26 = arith.constant 0 : index
    %c0_27 = arith.constant 0 : index
    %45 = vector.load %arg10[%c0_26, %c0_27] : memref<8x128xf32, #tpu.memory_space<vmem>>, vector<8x128xf32>
    tpu.vector_store %arg10[%c0_26, %c0_27], %44 {strides = array<i32>} : memref<8x128xf32, #tpu.memory_space<vmem>>, vector<8x128xf32>,
    return
  }
  func.func @transform_0(%arg0: i32) -> (i32, i32) {
    %c0_i32 = arith.constant 0 : i32
    %c0_i32_0 = arith.constant 0 : i32
    return %arg0, %c0_i32 : i32, i32
  }
  func.func @transform_1(%arg0: i32) -> (i32, i32) {
    %c0_i32 = arith.constant 0 : i32
    %c0_i32_0 = arith.constant 0 : i32
    %c0_i32_1 = arith.constant 0 : i32
    return %c0_i32, %c0_i32_0 : i32, i32
  }
  func.func @transform_2(%arg0: i32) -> (i32, i32) {
    %c0_i32 = arith.constant 0 : i32
    %c0_i32_0 = arith.constant 0 : i32
    %c0_i32_1 = arith.constant 0 : i32
    return %c0_i32, %c0_i32_0 : i32, i32
  }
  func.func @transform_3(%arg0: i32) -> (i32, i32) {
    %c0_i32 = arith.constant 0 : i32
    %c0_i32_0 = arith.constant 0 : i32
    %c0_i32_1 = arith.constant 0 : i32
    return %c0_i32, %c0_i32_0 : i32, i32
  }
  func.func @transform_4(%arg0: i32) -> (i32, i32) {
    %c0_i32 = arith.constant 0 : i32
    %c0_i32_0 = arith.constant 0 : i32
    %c0_i32_1 = arith.constant 0 : i32
    return %c0_i32, %c0_i32_0 : i32, i32
  }
  func.func @transform_5(%arg0: i32) -> (i32, i32) {
    %c0_i32 = arith.constant 0 : i32
    %c0_i32_0 = arith.constant 0 : i32
    %c0_i32_1 = arith.constant 0 : i32
    return %c0_i32, %c0_i32_0 : i32, i32
  }
  func.func @transform_6(%arg0: i32) -> (i32, i32) {
    %c0_i32 = arith.constant 0 : i32
    %c0_i32_0 = arith.constant 0 : i32
    %c0_i32_1 = arith.constant 0 : i32
    return %c0_i32, %c0_i32_0 : i32, i32
  }
  func.func @transform_7(%arg0: i32) -> (i32, i32) {
    %c0_i32 = arith.constant 0 : i32
    %c0_i32_0 = arith.constant 0 : i32
    %c0_i32_1 = arith.constant 0 : i32
    return %c0_i32, %c0_i32_0 : i32, i32
  }
  func.func @transform_8(%arg0: i32) -> (i32, i32) {
    %c0_i32 = arith.constant 0 : i32
    %c0_i32_0 = arith.constant 0 : i32
    %c0_i32_1 = arith.constant 0 : i32
    return %c0_i32, %c0_i32_0 : i32, i32
  }
  func.func @transform_9(%arg0: i32) -> (i32, i32) {
    %c0_i32 = arith.constant 0 : i32
    %c0_i32_0 = arith.constant 0 : i32
    return %arg0, %c0_i32 : i32, i32
  }
}

</mosaic_0001>

<bundles_post_ra>
// kernel: tpu_custom_call.1
= control target key start
LH: loop header
LB: loop body
LE: loop exit
PB: predicated region body
PF: predicated region fallthrough
CT: control target
= control target key end

     0   :  { %14 = vsyncpa [#allocation3], 0  ;;  %s1534_s0 = inlined_call_operand.hbm [shape: bf16[8,784], index: 0, kind: input, shape index: {}]   ;;  %s1535_s1 = inlined_call_operand.hbm [shape: bf16[784,128], index: 1, kind: input, shape index: {}]   ;;  %s1536_s2 = inlined_call_operand.vmem [shape: f32[1,128], index: 2, kind: input, shape index: {}]   ;;  %s1537_s3 = inlined_call_operand.hbm [shape: bf16[128,128], index: 3, kind: input, shape index: {}]   ;;  %s1538_s4 = inlined_call_operand.vmem [shape: f32[1,128], index: 4, kind: input, shape index: {}]   ;;  %s1539_s5 = inlined_call_operand.hbm [shape: bf16[128,128], index: 5, kind: input, shape index: {}]   ;;  %s1540_s6 = inlined_call_operand.vmem [shape: f32[1,128], index: 6, kind: input, shape index: {}]   ;;  %s1541_s7 = inlined_call_operand.hbm [shape: bf16[128,128], index: 7, kind: input, shape index: {}]   ;;  %s1542_s8 = inlined_call_operand.vmem [shape: f32[1,128], index: 8, kind: input, shape index: {}]   ;;  %s1543_s9 = inlined_call_operand.hbm [shape: f32[8,128], index: 9, kind: output, shape index: {}]  }
   0x1   :  { %15 = vsyncpa [#allocation6], 0 }
   0x2   :  { %16 = vsyncpa [#allocation9], 0  ;;  %s33_s11 = sshll.u32 %s1535_s1, 4  ;;  %s34_s11 = int_to_ptr.hbm [resolvable:$true] %s33_s11 }
   0x3   :  { %17 = vsyncpa [#allocation4], 0  ;;  %s1446_s12 = smov [#allocation5]   ;;  %s63_s16 = sshll.u32 %s1539_s5, 4  ;;  %s64_s16 = int_to_ptr.hbm [resolvable:$true] %s63_s16 }
   0x4   :  { %s35_s13 = sshll.u32 %s1446_s12, 4  ;;  %s1447_s17 = smov 64   ;;  %s36_s13 = int_to_ptr.vmem [resolvable:$true] %s35_s13 }
   0x5   :  { %s1448_s18 = smov 4   ;;  %s1449_s19 = smov [#allocation8]  }
   0x6   :  { %41 = dma.hbm_to_vmem [thread:$0]  %s34_s11, 6272, %s36_s13, [#allocation6], %s1447_s17, %s1447_s17, %s1448_s18  }
   0x7   :  { %s65_s20 = sshll.u32 %s1449_s19, 4  ;;  %s23_s23 = sshll.u32 %s1534_s0, 4  ;;  %s66_s20 = int_to_ptr.vmem [resolvable:$true] %s65_s20  ;;  %s24_s23 = int_to_ptr.hbm [resolvable:$true] %s23_s23 }
   0x8   :  { %71 = dma.hbm_to_vmem [thread:$0]  %s64_s16, 1024, %s66_s20, [#allocation9], %s1447_s17, %s1447_s17, %s1448_s18  }
   0x9   :  { %s48_s25 = sshll.u32 %s1537_s3, 4  ;;  %s1450_s26 = smov [#allocation2]   ;;  %s49_s25 = int_to_ptr.hbm [resolvable:$true] %s48_s25 }
   0xa   :  { %s25_s27 = sshll.u32 %s1450_s26, 4  ;;  %s1451_s5 = smov [#allocation7]   ;;  %s26_s27 = int_to_ptr.vmem [resolvable:$true] %s25_s27 }
   0xb   :  { %28 = dma.hbm_to_vmem [thread:$0]  %s24_s23, 448, %s26_s27, [#allocation3]  }
   0xc   :  { %s50_s28 = sshll.u32 %s1451_s5, 4  ;;  %s78_s10 = sshll.u32 %s1541_s7, 4  ;;  %s51_s28 = int_to_ptr.vmem [resolvable:$true] %s50_s28  ;;  %s79_s10 = int_to_ptr.hbm [resolvable:$true] %s78_s10 }
   0xd   :  { %56 = dma.hbm_to_vmem [thread:$0]  %s49_s25, 1024, %s51_s28, [#allocation6], %s1447_s17, %s1447_s17, %s1448_s18  }
   0xe   :  { %s1452_s0 = smov [#allocation10]  }
   0xf   :  { %s80_s11 = sshll.u32 %s1452_s0, 4  ;;  %s81_s11 = int_to_ptr.vmem [resolvable:$true] %s80_s11 }
  0x10   :  { %86 = dma.hbm_to_vmem [thread:$0]  %s79_s10, 1024, %s81_s11, [#allocation9], %s1447_s17, %s1447_s17, %s1448_s18  }
  0x11   :  { %1438 = dma.done.wait [#allocation3], 448  }
  0x12   :  { %1439 = vsyncadd [#allocation3], 4294966848 }
  0x13   :  { %1440 = dma.done.wait [#allocation6], 7296  }
  0x14   :  { %1441 = vsyncadd [#allocation6], 4294960000 }
  0x15   :  { %1442 = dma.done.wait [#allocation9], 2048  }
  0x16   :  { %1443 = vsyncadd [#allocation9], 4294965248  ;;  %v1212_v0 = vld [vmem:[#allocation5 + $0x38] sm:$0xff]  ;;  %v1211_v3 = vld [vmem:[#allocation5 + $0x30] sm:$0xff]  ;;  %vm534_vm0 = vcmask 130048  }
  0x17   :  { %v1220_v1 = vld [vmem:[#allocation5 + $0x78] sm:$0xff]  ;;  %538 = vmatpush.bf16.msra.mxu0 %v1212_v0  ;;  %v1219_v4 = vld [vmem:[#allocation5 + $0x70] sm:$0xff]  ;;  %v1210_v8 = vld [vmem:[#allocation5 + $0x28] sm:$0xff] }
  0x18   :  { %v1228_v2 = vld [vmem:[#allocation5 + $0xb8] sm:$0xff]  ;;  %551 = vmatpush.bf16.msra.mxu1 %v1220_v1  ;;  %v1227_v5 = vld [vmem:[#allocation5 + $0xb0] sm:$0xff]  ;;  %v1218_v9 = vld [vmem:[#allocation5 + $0x68] sm:$0xff] }
  0x19   :  { %564 = vmatpush.bf16.msra.mxu2 %v1228_v2  ;;  %v1236_v6 = vld [vmem:[#allocation5 + $0xf8] sm:$0xff]  ;;  %v1235_v7 = vld [vmem:[#allocation5 + $0xf0] sm:$0xff]  ;;  %v1226_v10 = vld [vmem:[#allocation5 + $0xa8] sm:$0xff] }
  0x1a   :  { %577 = vmatpush.bf16.msra.mxu3 %v1236_v6  ;;  %v1234_v11 = vld [vmem:[#allocation5 + $0xe8] sm:$0xff]  ;;  %v1209_v12 = vld [vmem:[#allocation5 + $0x20] sm:$0xff]  ;;  %v1208_v16 = vld [vmem:[#allocation5 + $0x18] sm:$0xff] }
  0x1b   :  { %539 = vmatpush.bf16.msra.mxu0 %v1211_v3  ;;  %v1217_v13 = vld [vmem:[#allocation5 + $0x60] sm:$0xff]  ;;  %v1216_v17 = vld [vmem:[#allocation5 + $0x58] sm:$0xff]  ;;  %v1207_v20 = vld [vmem:[#allocation5 + $0x10] sm:$0xff] }
  0x1c   :  { %552 = vmatpush.bf16.msra.mxu1 %v1219_v4  ;;  %v1225_v14 = vld [vmem:[#allocation5 + $0xa0] sm:$0xff]  ;;  %v1224_v18 = vld [vmem:[#allocation5 + $0x98] sm:$0xff]  ;;  %v1215_v21 = vld [vmem:[#allocation5 + $0x50] sm:$0xff] }
  0x1d   :  { %565 = vmatpush.bf16.msra.mxu2 %v1227_v5  ;;  %v1233_v15 = vld [vmem:[#allocation5 + $0xe0] sm:$0xff]  ;;  %v1232_v19 = vld [vmem:[#allocation5 + $0xd8] sm:$0xff]  ;;  %v1223_v22 = vld [vmem:[#allocation5 + $0x90] sm:$0xff] }
  0x1e   :  { %578 = vmatpush.bf16.msra.mxu3 %v1235_v7  ;;  %v1231_v23 = vld [vmem:[#allocation5 + $0xd0] sm:$0xff]  ;;  %v1206_v24 = vld [vmem:[#allocation5 + $0x8] sm:$0xff]  ;;  %v1205_v32 = vld [vmem:[#allocation5] sm:$0xff] }
  0x1f   :  { %540 = vmatpush.bf16.msra.mxu0 %v1210_v8  ;;  %v1214_v25 = vld [vmem:[#allocation5 + $0x48] sm:$0xff]  ;;  %v1213_v33 = vld [vmem:[#allocation5 + $0x40] sm:$0xff]  ;;  %v1244_v34 = vld [vmem:[#allocation5 + $0x138] sm:$0xff] }
  0x20   :  { %553 = vmatpush.bf16.msra.mxu1 %v1218_v9  ;;  %v110_v26 = vld [vmem:[#allocation2] sm:$0xff]  ;;  %v111_v28 = vld [vmem:[#allocation2 + $0x8] sm:$0xff]  ;;  %v1252_v35 = vld [vmem:[#allocation5 + $0x178] sm:$0xff] }
  0x21   :  { %566 = vmatpush.bf16.msra.mxu2 %v1226_v10  ;;  %v1222_v27 = vld [vmem:[#allocation5 + $0x88] sm:$0xff]  ;;  %v220_v29 = vunpack.c.l.b16 %v110_v26  ;;  %v221_v31 = vunpack.c.h.b16 %v110_v26  ;;  %v1221_v36 = vld [vmem:[#allocation5 + $0x80] sm:$0xff]  ;;  %v222_v37 = vunpack.c.l.b16 %v111_v28  ;;  %v223_v40 = vunpack.c.h.b16 %v111_v28  ;;  %v1243_v43 = vld [vmem:[#allocation5 + $0x130] sm:$0xff] }
  0x22   :  { %579 = vmatpush.bf16.msra.mxu3 %v1234_v11  ;;  %v1230_v30 = vld [vmem:[#allocation5 + $0xc8] sm:$0xff]  ;;  %v1229_v41 = vld [vmem:[#allocation5 + $0xc0] sm:$0xff]  ;;  %v1251_v44 = vld [vmem:[#allocation5 + $0x170] sm:$0xff] }
  0x23   :  { %541 = vmatpush.bf16.msra.mxu0 %v1209_v12  ;;  %v227_v38 = vpack.c.b16 %v220_v29, %v220_v29  ;;  %v228_v39 = vpack.c.b16 %v221_v31, %v221_v31  ;;  %v1253_v42 = vld [vmem:[#allocation5 + $0x180] sm:$0xff]  ;;  %v229_v45 = vpack.c.b16 %v222_v37, %v222_v37  ;;  %v230_v46 = vpack.c.b16 %v223_v40, %v223_v40  ;;  %v1242_v47 = vld [vmem:[#allocation5 + $0x128] sm:$0xff]  ;;  %v113_v51 = vld [vmem:[#allocation2 + $0x18] sm:$0xf] }
  0x24   :  { %554 = vmatpush.bf16.msra.mxu1 %v1217_v13  ;;  %v1250_v48 = vld [vmem:[#allocation5 + $0x168] sm:$0xff]  ;;  %v1241_v49 = vld [vmem:[#allocation5 + $0x120] sm:$0xff]  ;;  %v1240_v52 = vld [vmem:[#allocation5 + $0x118] sm:$0xff]  ;;  %v226_v54 = vunpack.c.l.b16 %v113_v51 }
  0x25   :  { %567 = vmatpush.bf16.msra.mxu2 %v1225_v14  ;;  %v1249_v50 = vld [vmem:[#allocation5 + $0x160] sm:$0xff]  ;;  %v1248_v53 = vld [vmem:[#allocation5 + $0x158] sm:$0xff]  ;;  %v1239_v55 = vld [vmem:[#allocation5 + $0x110] sm:$0xff] }
  0x26   :  { %580 = vmatpush.bf16.msra.mxu3 %v1233_v15  ;;  %v1247_v56 = vld [vmem:[#allocation5 + $0x150] sm:$0xff]  ;;  %v233_v57 = vpack.c.b16 %v226_v54, %v226_v54  ;;  %v1238_v58 = vld [vmem:[#allocation5 + $0x108] sm:$0xff]  ;;  %v1237_v63 = vld [vmem:[#allocation5 + $0x100] sm:$0xff] }
  0x27   :  { %542 = vmatpush.bf16.msra.mxu0 %v1208_v16  ;;  %v1246_v59 = vld [vmem:[#allocation5 + $0x148] sm:$0xff]  ;;  %v112_v60 = vld [vmem:[#allocation2 + $0x10] sm:$0xff]  ;;  %v1245_v0 = vld [vmem:[#allocation5 + $0x140] sm:$0xff] }
  0x28   :  { %555 = vmatpush.bf16.msra.mxu1 %v1216_v17  ;;  %v224_v61 = vunpack.c.l.b16 %v112_v60  ;;  %v225_v62 = vunpack.c.h.b16 %v112_v60  ;;  %v1261_v3 = vld [vmem:[#allocation7 + $0x38] sm:$0xff]  ;;  %v1260_v4 = vld [vmem:[#allocation7 + $0x30] sm:$0xff]  ;;  %v1259_v5 = vld [vmem:[#allocation7 + $0x28] sm:$0xff] }
  0x29   :  { %568 = vmatpush.bf16.msra.mxu2 %v1224_v18  ;;  %v1258_v6 = vld [vmem:[#allocation7 + $0x20] sm:$0xff]  ;;  %v1257_v7 = vld [vmem:[#allocation7 + $0x18] sm:$0xff]  ;;  %v1256_v8 = vld [vmem:[#allocation7 + $0x10] sm:$0xff] }
  0x2a   :  { %581 = vmatpush.bf16.msra.mxu3 %v1232_v19  ;;  %v231_v1 = vpack.c.b16 %v224_v61, %v224_v61  ;;  %v232_v2 = vpack.c.b16 %v225_v62, %v225_v62  ;;  %v1255_v9 = vld [vmem:[#allocation7 + $0x8] sm:$0xff]  ;;  %v1254_v12 = vld [vmem:[#allocation7] sm:$0xff]  ;;  %v1269_v15 = vld [vmem:[#allocation8 + $0x38] sm:$0xff] }
  0x2b   :  { %543 = vmatpush.bf16.msra.mxu0 %v1207_v20  ;;  %v1268_v18 = vld [vmem:[#allocation8 + $0x30] sm:$0xff]  ;;  %v1286_v19 = vld [vmem:[%s1536_s2] ss:$0 sm:$0xff]  ;;  %v1267_v20 = vld [vmem:[#allocation8 + $0x28] sm:$0xff] }
  0x2c   :  { %556 = vmatpush.bf16.msra.mxu1 %v1215_v21  ;;  %v1265_v26 = vld [vmem:[#allocation8 + $0x18] sm:$0xff]  ;;  %v1264_v29 = vld [vmem:[#allocation8 + $0x10] sm:$0xff] }
  0x2d   :  { %569 = vmatpush.bf16.msra.mxu2 %v1223_v22 }
  0x2e   :  { %582 = vmatpush.bf16.msra.mxu3 %v1231_v23 }
  0x2f   :  { %544 = vmatpush.bf16.msra.mxu0 %v1206_v24  ;;  %v1266_v24 = vld [vmem:[#allocation8 + $0x20] sm:$0xff] }
  0x30   :  { %557 = vmatpush.bf16.msra.mxu1 %v1214_v25 }
  0x31   :  { %570 = vmatpush.bf16.msra.mxu2 %v1222_v27 }
  0x32   :  { %583 = vmatpush.bf16.msra.mxu3 %v1230_v30 }
  0x33   :  { %545 = vmatpush.bf16.msra.mxu0 %v1205_v32 }
  0x34   :  { %558 = vmatpush.bf16.msra.mxu1 %v1213_v33 }
  0x35   :  { %571 = vmatpush.bf16.msra.mxu2 %v1221_v36 }
  0x36   :  { %546 = vmatmul.bf16.vlgmr.msra.gmra.mxu0 %v227_v38  ;;  %584 = vmatpush.bf16.msra.mxu3 %v1229_v41  ;;  %v1263_v41 = vld [vmem:[#allocation8 + $0x8] sm:$0xff] }
  0x37   :  { %590 = vmatpush.bf16.msrb.mxu0 %v1244_v34  ;;  %559 = vmatmul.bf16.vlgmr.msra.gmra.mxu1 %v228_v39 }
  0x38   :  { %603 = vmatpush.bf16.msrb.mxu1 %v1252_v35  ;;  %572 = vmatmul.bf16.vlgmr.msra.gmra.mxu2 %v229_v45  ;;  %v1275_v45 = vld [vmem:[#allocation10 + $0x28] sm:$0xff] }
  0x39   :  { %623 = vmatpush.bf16.msrb.mxu2 %v1253_v42  ;;  %585 = vmatmul.bf16.vlgmr.msra.gmra.mxu3 %v230_v46  ;;  %v1262_v42 = vld [vmem:[#allocation8] sm:$0xff] }
  0x3a   :  { %699 = vmatpush.bf16.msrb.mxu3 %v1261_v3  ;;  %v1274_v46 = vld [vmem:[#allocation10 + $0x20] sm:$0xff] }
  0x3b   :  { %591 = vmatpush.bf16.msrb.mxu0 %v1243_v43  ;;  %v1277_v43 = vld [vmem:[#allocation10 + $0x38] sm:$0xff] }
  0x3c   :  { %604 = vmatpush.bf16.msrb.mxu1 %v1251_v44  ;;  %v1276_v44 = vld [vmem:[#allocation10 + $0x30] sm:$0xff] }
  0x3d   :  { %782 = vmatpush.bf16.msra.mxu2 %v1269_v15 }
  0x3e   :  { %700 = vmatpush.bf16.msrb.mxu3 %v1260_v4 }
  0x3f   :  { %592 = vmatpush.bf16.msrb.mxu0 %v1242_v47  ;;  %v1273_v47 = vld [vmem:[#allocation10 + $0x18] sm:$0xff] }
  0x40   :  { %605 = vmatpush.bf16.msrb.mxu1 %v1250_v48  ;;  %v1272_v48 = vld [vmem:[#allocation10 + $0x10] sm:$0xff] }
  0x41   :  { %783 = vmatpush.bf16.msra.mxu2 %v1268_v18 }
  0x42   :  { %701 = vmatpush.bf16.msrb.mxu3 %v1259_v5 }
  0x43   :  { %593 = vmatpush.bf16.msrb.mxu0 %v1241_v49  ;;  %v1287_v49 = vld [vmem:[%s1538_s4] ss:$0 sm:$0xff] }
  0x44   :  { %606 = vmatpush.bf16.msrb.mxu1 %v1249_v50 }
  0x45   :  { %784 = vmatpush.bf16.msra.mxu2 %v1267_v20 }
  0x46   :  { %702 = vmatpush.bf16.msrb.mxu3 %v1258_v6 }
  0x47   :  { %594 = vmatpush.bf16.msrb.mxu0 %v1240_v52 }
  0x48   :  { %607 = vmatpush.bf16.msrb.mxu1 %v1248_v53  ;;  %1108 = vmatmul.msk.bf16.vlgmr.msrb.gmra.mxu2 %vm534_vm0, %v233_v57  ;;  %v1288_v57 = vld [vmem:[%s1540_s6] ss:$0 sm:$0xff]  ;;  %s1453_s6 = smov [#allocation11]  }
  0x49   :  { %785 = vmatpush.bf16.msra.mxu2 %v1266_v24  ;;  %s898_s16 = sshll.u32 %s1453_s6, 4  ;;  %s899_s16 = int_to_ptr.vmem [resolvable:$true] %s898_s16 }
  0x4a   :  { %703 = vmatpush.bf16.msrb.mxu3 %v1257_v7 }
  0x4b   :  { %595 = vmatpush.bf16.msrb.mxu0 %v1239_v55  ;;  %v1271_v55 = vld [vmem:[#allocation10 + $0x8] sm:$0xff] }
  0x4c   :  { %608 = vmatpush.bf16.msrb.mxu1 %v1247_v56  ;;  %v1270_v56 = vld [vmem:[#allocation10] sm:$0xff] }
  0x4d   :  { %786 = vmatpush.bf16.msra.mxu2 %v1265_v26 }
  0x4e   :  { %704 = vmatpush.bf16.msrb.mxu3 %v1256_v8 }
  0x4f   :  { %596 = vmatpush.bf16.msrb.mxu0 %v1238_v58 }
  0x50   :  { %609 = vmatpush.bf16.msrb.mxu1 %v1246_v59 }
  0x51   :  { %787 = vmatpush.bf16.msra.mxu2 %v1264_v29 }
  0x52   :  { %705 = vmatpush.bf16.msrb.mxu3 %v1255_v9 }
  0x53   :  { %597 = vmatpush.bf16.msrb.mxu0 %v1237_v63  ;;  %v878_v63 = vlaneseq }
  0x54   :  { %610 = vmatpush.bf16.msrb.mxu1 %v1245_v0 }
  0x55   :  { %788 = vmatpush.bf16.msra.mxu2 %v1263_v41  ;;  %v879_v0 = vand.u32 127, %v878_v63 }
  0x56   :  { %598 = vmatmul.bf16.vlgmr.msrb.gmra.mxu0 %v231_v1  ;;  %706 = vmatpush.bf16.msrb.mxu3 %v1254_v12  ;;  %v1289_v1 = vld [vmem:[%s1542_s8] ss:$0 sm:$0xff]  ;;  %s900_s8 = sshll.u32 %s1543_s9, 4  ;;  %s901_s8 = int_to_ptr.hbm [resolvable:$true] %s900_s8 }
  0x57   :  { %611 = vmatmul.bf16.vlgmr.msrb.gmra.mxu1 %v232_v2  ;;  %865 = vmatpush.bf16.msra.mxu0 %v1277_v43  ;;  %vm880_vm1 = vcmp.lt.s32.totalorder %v879_v0, 10 }
  0x59   :  { %789 = vmatpush.bf16.msra.mxu2 %v1262_v42 }
  0x5b   :  { %866 = vmatpush.bf16.msra.mxu0 %v1276_v44 }
  0x5f   :  { %867 = vmatpush.bf16.msra.mxu0 %v1275_v45 }
  0x63   :  { %868 = vmatpush.bf16.msra.mxu0 %v1274_v46 }
  0x67   :  { %869 = vmatpush.bf16.msra.mxu0 %v1273_v47 }
  0x6b   :  { %870 = vmatpush.bf16.msra.mxu0 %v1272_v48 }
  0x6f   :  { %871 = vmatpush.bf16.msra.mxu0 %v1271_v55 }
  0x73   :  { %872 = vmatpush.bf16.msra.mxu0 %v1270_v56 }
  0xb3   :  { %v547_v10 = vpop.f32.mrf.mxu0 }
  0xb4   :  { %v560_v11 = vpop.f32.mrf.mxu1  ;;  %v548_v21 = vadd.f32 %v1286_v19, %v547_v10 }
  0xb6   :  { %v561_v25 = vadd.f32 %v560_v11, %v548_v21 }
  0xbb   :  { %v549_v13 = vpop.f32.mrf.mxu0  ;;  %v573_v16 = vpop.f32.mrf.mxu2 }
  0xbc   :  { %v562_v14 = vpop.f32.mrf.mxu1  ;;  %v586_v17 = vpop.f32.mrf.mxu3  ;;  %v574_v27 = vadd.f32 %v573_v16, %v561_v25 }
  0xbe   :  { %v587_v30 = vadd.f32 %v586_v17, %v574_v27 }
  0xc3   :  { %v575_v22 = vpop.f32.mrf.mxu2 }
  0xc4   :  { %v588_v23 = vpop.f32.mrf.mxu3 }
  0xcb   :  { %v625_v28 = vpop.f32.mrf.mxu2 }
  0xd3   :  { %v599_v31 = vpop.f32.mrf.mxu0  ;;  %v627_v35 = vpop.f32.mrf.mxu2 }
  0xd4   :  { %v612_v32 = vpop.f32.mrf.mxu1  ;;  %v600_v33 = vadd.f32 %v599_v31, %v587_v30 }
  0xd6   :  { %v613_v34 = vadd.f32 %v612_v32, %v600_v33 }
  0xd8   :  { %v626_v36 = vadd.f32 %v625_v28, %v613_v34 }
  0xda   :  { %v629_v37 = vmax.f32 %v626_v36, 0.0 }
  0xdb   :  { %v601_v38 = vpop.f32.mrf.mxu0 }
  0xdc   :  { %v614_v39 = vpop.f32.mrf.mxu1  ;;  %v630_v40 = vpack.c.bf16 %v629_v37, %v629_v37 }
  0xde   :  { %707 = vmatmul.bf16.vlgmr.msrb.gmra.mxu3 %v630_v40 }
 0x161   :  { %v708_v50 = vpop.f32.mrf.mxu3 }
 0x162   :  { %v709_v51 = vadd.f32 %v1287_v49, %v708_v50 }
 0x164   :  { %v712_v52 = vmax.f32 %v709_v51, 0.0 }
 0x166   :  { %v713_v53 = vpack.c.bf16 %v712_v52, %v712_v52 }
 0x168   :  { %790 = vmatmul.bf16.vlgmr.msra.gmra.mxu2 %v713_v53 }
 0x169   :  { %v710_v54 = vpop.f32.mrf.mxu3 }
 0x1eb   :  { %v791_v58 = vpop.f32.mrf.mxu2 }
 0x1ec   :  { %v792_v59 = vadd.f32 %v1288_v57, %v791_v58 }
 0x1ee   :  { %v795_v60 = vmax.f32 %v792_v59, 0.0 }
 0x1f0   :  { %v796_v61 = vpack.c.bf16 %v795_v60, %v795_v60 }
 0x1f2   :  { %873 = vmatmul.bf16.vlgmr.msra.gmra.mxu0 %v796_v61 }
 0x1f3   :  { %v793_v62 = vpop.f32.mrf.mxu2 }
 0x26f   :  { %v874_v2 = vpop.f32.mrf.mxu0 }
 0x270   :  { %v875_v3 = vadd.f32 %v1289_v1, %v874_v2 }
 0x272   :  { %v881_v4 = vsel %vm880_vm1, %v875_v3, -1e+30 }
 0x273   :  { %882 = vmax.xlane.f32.xlu0 %v881_v4 }
 0x277   :  { %v876_v5 = vpop.f32.mrf.mxu0 }
 0x2e6   :  { %v883_v6 = vpop.xlane.xlu0 %882 }
 0x2e7   :  { %v884_v7 = vsub.f32 %v881_v4, %v883_v6 }
 0x2e9   :  { %v885_v8 = vmul.f32 1.442695, %v884_v7 }
 0x2eb   :  { %1290 = vpow2.f32 %v885_v8 }
 0x2f1   :  { %v1291_v9 = vpop.eup %1290 }
 0x2f2   :  { %887 = vadd.xlane.f32.xlu0 %v1291_v9 }
 0x365   :  { %v888_v10 = vpop.xlane.xlu0 %887 }
 0x366   :  { %1292 = vlog2.f32 %v888_v10 }
 0x36c   :  { %v1293_v11 = vpop.eup %1292 }
 0x36d   :  { %v890_v12 = vmul.f32 0.6931472, %v1293_v11 }
 0x36f   :  { %v891_v13 = vsub.f32 %v884_v7, %v890_v12 }
 0x371   :  { %892 = vst [vmem:[#allocation11] sm:$0xff] %v891_v13 }
 0x372   :  { %903 = dma.vmem_to_hbm [thread:$0]  %s899_s16, 128, %s901_s8, [#allocation4]  }
 0x373   :  { %1444 = dma.done.wait [#allocation4], 128  }
 0x374   :  { %1445 = vsyncadd [#allocation4], 4294967168 }
 0x375   :  { %908 = vsyncpa [#allocation3], 1 }
 0x376   :  { %909 = vsyncpa [#allocation6], 1 }
 0x377   :  { %910 = vsyncpa [#allocation9], 1 }
 0x378   :  { %911 = vsyncpa [#allocation4], 1 }

</bundles_post_ra>
